<compile_context>
chip_gen: v7x
topology: tpu7x:2x2x1
jax: 0.10.0
libtpu: 0.0.40
codegen_flags: <defaults>
</compile_context>

<pallas_src>
from functools import partial

import jax
import jax.numpy as jnp
import numpy as np
from jax.experimental import pallas as pl
from jax.experimental.pallas import tpu as pltpu


LANE = 128     # f32 lane width of a vreg
MXU_V6 = 256   # v6e/v7x systolic array side


def _round_up(n, m):
    return ((n + m - 1) // m) * m


def _pad_dim(n):
    """Common padded feature width: 128-lane aligned; full 256 MXU tiles once
    any layer is >=256 wide (v6e/v7x)."""
    if n <= LANE:
        return LANE
    return _round_up(n, MXU_V6)


def _fused_mlp_kernel(x_ref, w_ref, b_ref, o_ref, h_ref,
                      *, n_layers: int, in_size: int, use_bf16: bool):
    """Single-block fused MLP.

    x_ref : (B, in_size)          unpadded activations (VMEM)
    w_ref : (L, D_pad, D_pad)     stacked zero-padded weights (VMEM)
    b_ref : (L, 1, D_pad)         stacked zero-padded biases (VMEM)
    o_ref : (B, D_pad)            lane-dense padded output (VMEM)
    h_ref : (B, D_pad)            VMEM scratch used to zero-extend x in-kernel
    """
    # In-kernel zero-extension of x to the padded lane width (no HBM pad op).
    h_ref[...] = jnp.zeros_like(h_ref)
    h_ref[:, :in_size] = x_ref[...]
    h = h_ref[...]

    for i in range(n_layers):
        w = w_ref[i]              # (D_pad, D_pad), static index -> no copy
        b = b_ref[i]              # (1, D_pad)
        if use_bf16:
            # bf16 MXU operands, f32 accumulation; bias/tanh stay f32.
            h = jnp.dot(h.astype(jnp.bfloat16), w.astype(jnp.bfloat16),
                        preferred_element_type=jnp.float32) + b
        else:
            h = jnp.dot(h, w, preferred_element_type=jnp.float32) + b
        if i < n_layers - 1:
            h = jnp.tanh(h)       # EUP transcendental (hidden layers only)
            # dropout(p=0.0) == identity -> no-op
    o_ref[...] = h.astype(o_ref.dtype)


def init_params(key, input_size, layer_size, output_size, dtype=jnp.float32):
    """Deterministic init matching nn.Linear's U(-1/sqrt(fan_in), 1/sqrt(fan_in))."""
    layer_hidden = np.concatenate([[input_size], layer_size, [output_size]]).astype(int)
    params = []
    for idx in range(len(layer_hidden) - 1):
        fan_in = int(layer_hidden[idx])
        fan_out = int(layer_hidden[idx + 1])
        bound = 1.0 / np.sqrt(fan_in)
        kw, kb, key = jax.random.split(key, 3)
        w = jax.random.uniform(kw, (fan_in, fan_out), dtype, -bound, bound)
        b = jax.random.uniform(kb, (fan_out,), dtype, -bound, bound)
        params.append((w, b))
    return params


def prep_params(params):
    """One-time prep: zero-pad every W/b to a single common lane-aligned width
    D_pad and stack them into (L, D_pad, D_pad) / (L, 1, D_pad).

    Zero padding keeps the math exact: padded input columns are zero, padded
    weight rows/cols and biases are zero, so padded hidden columns stay at
    tanh(0)=0 and contribute nothing downstream.  Padded *output* columns are
    sliced off in the wrapper.
    """
    dims = [params[0][0].shape[0]] + [w.shape[1] for w, _ in params]
    d_pad = _pad_dim(max(dims))
    n_layers = len(params)

    w_stack = np.zeros((n_layers, d_pad, d_pad), np.float32)
    b_stack = np.zeros((n_layers, 1, d_pad), np.float32)
    for i, (w, b) in enumerate(params):
        fan_in, fan_out = w.shape
        w_stack[i, :fan_in, :fan_out] = np.asarray(w)
        b_stack[i, 0, :fan_out] = np.asarray(b)
    return jnp.asarray(w_stack), jnp.asarray(b_stack)


@partial(jax.jit, static_argnames=("out_size", "use_bf16"))
def model_ann_forward(x, w_stack, b_stack, *, out_size, use_bf16=False):
    """Forward pass identical to the PyTorch module (dropout p=0.0 => identity).

    One fused Pallas kernel (no grid, single VMEM-resident block) for the
    whole MLP; pad + kernel + slice fuse into one jitted executable.
    """
    B, in_size = x.shape
    n_layers, d_pad, _ = w_stack.shape

    vmem_spec = pl.BlockSpec(memory_space=pltpu.MemorySpace.VMEM)

    y_pad = pl.pallas_call(
        partial(_fused_mlp_kernel,
                n_layers=n_layers, in_size=in_size, use_bf16=use_bf16),
        out_shape=jax.ShapeDtypeStruct((B, d_pad), x.dtype),
        in_specs=[vmem_spec, vmem_spec, vmem_spec],
        out_specs=vmem_spec,
        scratch_shapes=[pltpu.VMEM((B, d_pad), jnp.float32)],
    )(x, w_stack, b_stack)

    # Slice out the real output columns (fused into the same jit).
    return y_pad[:, :out_size]


if __name__ == "__main__":
    key = jax.random.PRNGKey(0)

    # Small shapes consistent with the module's constructor signature.
    batch = 8
    input_size = 32
    layer_size = [64, 48]
    output_size = 16

    k_params, k_x = jax.random.split(key)
    params = init_params(k_params, input_size, layer_size, output_size)
    w_stack, b_stack = prep_params(params)
    x = jax.random.normal(k_x, (batch, input_size), jnp.float32)

    y = model_ann_forward(x, w_stack, b_stack, out_size=output_size)
    jax.block_until_ready(y)

    # Pure-JAX reference of the same math (unpadded, f32).
    ref = x
    for w, b in params[:-1]:
        ref = jnp.tanh(ref @ w + b)
    ref = ref @ params[-1][0] + params[-1][1]
    np.testing.assert_allclose(np.asarray(y), np.asarray(ref), rtol=1e-5, atol=1e-5)

    assert y.shape == (batch, output_size)
    print("KERNEL_OK")
</pallas_src>

<mosaic_0001>
module attributes {stable_mosaic.version = 11 : i64} {
  func.func @_fused_mlp_kernel(%arg0: memref<8x32xf32, #tpu.memory_space<vmem>>, %arg1: memref<3x128x128xf32, #tpu.memory_space<vmem>>, %arg2: memref<3x1x128xf32, #tpu.memory_space<vmem>>, %arg3: memref<8x128xf32, #tpu.memory_space<vmem>>, %arg4: memref<8x128xf32, #tpu.memory_space<vmem>>) attributes {dimension_semantics = [], scalar_prefetch = 0 : i64, scratch_operands = 1 : i64, tpu.core_type = #tpu.core_type<tc>} {
    %cst = arith.constant 0.000000e+00 : f32
    %0 = vector.broadcast %cst : f32 to vector<8x128xf32>
    %c0 = arith.constant 0 : index
    %c0_0 = arith.constant 0 : index
    %1 = vector.load %arg4[%c0, %c0_0] : memref<8x128xf32, #tpu.memory_space<vmem>>, vector<8x128xf32>
    tpu.vector_store %arg4[%c0, %c0_0], %0 {strides = array<i32>} : memref<8x128xf32, #tpu.memory_space<vmem>>, vector<8x128xf32>,
    %c0_1 = arith.constant 0 : index
    %c0_2 = arith.constant 0 : index
    %2 = vector.load %arg0[%c0_1, %c0_2] : memref<8x32xf32, #tpu.memory_space<vmem>>, vector<8x32xf32>
    %c0_3 = arith.constant 0 : index
    %c0_4 = arith.constant 0 : index
    %3 = vector.load %arg4[%c0_3, %c0_4] : memref<8x128xf32, #tpu.memory_space<vmem>>, vector<8x32xf32>
    tpu.vector_store %arg4[%c0_3, %c0_4], %2 {strides = array<i32>} : memref<8x128xf32, #tpu.memory_space<vmem>>, vector<8x32xf32>,
    %c0_5 = arith.constant 0 : index
    %c0_6 = arith.constant 0 : index
    %4 = vector.load %arg4[%c0_5, %c0_6] : memref<8x128xf32, #tpu.memory_space<vmem>>, vector<8x128xf32>
    %c0_7 = arith.constant 0 : index
    %c0_8 = arith.constant 0 : index
    %c0_9 = arith.constant 0 : index
    %5 = vector.load %arg1[%c0_7, %c0_8, %c0_9] : memref<3x128x128xf32, #tpu.memory_space<vmem>>, vector<1x128x128xf32>
    %6 = vector.shape_cast %5 : vector<1x128x128xf32> to vector<128x128xf32>
    %c0_10 = arith.constant 0 : index
    %c0_11 = arith.constant 0 : index
    %c0_12 = arith.constant 0 : index
    %7 = vector.load %arg2[%c0_10, %c0_11, %c0_12] : memref<3x1x128xf32, #tpu.memory_space<vmem>>, vector<1x1x128xf32>
    %8 = vector.shape_cast %7 : vector<1x1x128xf32> to vector<1x128xf32>
    %cst_13 = arith.constant dense<0.000000e+00> : vector<8x128xf32>
    %9 = tpu.matmul %4, %6, %cst_13 {dimension_numbers = #tpu.dot_dimension_numbers<[1], [0], [0], [1], [0, 0, 1, 1], [], []>} : vector<8x128xf32>, vector<128x128xf32>, vector<8x128xf32> -> vector<8x128xf32>
    %10 = vector.broadcast %8 : vector<1x128xf32> to vector<8x128xf32>
    %11 = arith.addf %9, %10 : vector<8x128xf32>
    %12 = math.tanh %11 : vector<8x128xf32>
    %c1 = arith.constant 1 : index
    %c0_14 = arith.constant 0 : index
    %c0_15 = arith.constant 0 : index
    %13 = vector.load %arg1[%c1, %c0_14, %c0_15] : memref<3x128x128xf32, #tpu.memory_space<vmem>>, vector<1x128x128xf32>
    %14 = vector.shape_cast %13 : vector<1x128x128xf32> to vector<128x128xf32>
    %c1_16 = arith.constant 1 : index
    %c0_17 = arith.constant 0 : index
    %c0_18 = arith.constant 0 : index
    %15 = vector.load %arg2[%c1_16, %c0_17, %c0_18] : memref<3x1x128xf32, #tpu.memory_space<vmem>>, vector<1x1x128xf32>
    %16 = vector.shape_cast %15 : vector<1x1x128xf32> to vector<1x128xf32>
    %cst_19 = arith.constant dense<0.000000e+00> : vector<8x128xf32>
    %17 = tpu.matmul %12, %14, %cst_19 {dimension_numbers = #tpu.dot_dimension_numbers<[1], [0], [0], [1], [0, 0, 1, 1], [], []>} : vector<8x128xf32>, vector<128x128xf32>, vector<8x128xf32> -> vector<8x128xf32>
    %18 = vector.broadcast %16 : vector<1x128xf32> to vector<8x128xf32>
    %19 = arith.addf %17, %18 : vector<8x128xf32>
    %20 = math.tanh %19 : vector<8x128xf32>
    %c2 = arith.constant 2 : index
    %c0_20 = arith.constant 0 : index
    %c0_21 = arith.constant 0 : index
    %21 = vector.load %arg1[%c2, %c0_20, %c0_21] : memref<3x128x128xf32, #tpu.memory_space<vmem>>, vector<1x128x128xf32>
    %22 = vector.shape_cast %21 : vector<1x128x128xf32> to vector<128x128xf32>
    %c2_22 = arith.constant 2 : index
    %c0_23 = arith.constant 0 : index
    %c0_24 = arith.constant 0 : index
    %23 = vector.load %arg2[%c2_22, %c0_23, %c0_24] : memref<3x1x128xf32, #tpu.memory_space<vmem>>, vector<1x1x128xf32>
    %24 = vector.shape_cast %23 : vector<1x1x128xf32> to vector<1x128xf32>
    %cst_25 = arith.constant dense<0.000000e+00> : vector<8x128xf32>
    %25 = tpu.matmul %20, %22, %cst_25 {dimension_numbers = #tpu.dot_dimension_numbers<[1], [0], [0], [1], [0, 0, 1, 1], [], []>} : vector<8x128xf32>, vector<128x128xf32>, vector<8x128xf32> -> vector<8x128xf32>
    %26 = vector.broadcast %24 : vector<1x128xf32> to vector<8x128xf32>
    %27 = arith.addf %25, %26 : vector<8x128xf32>
    %c0_26 = arith.constant 0 : index
    %c0_27 = arith.constant 0 : index
    %28 = vector.load %arg3[%c0_26, %c0_27] : memref<8x128xf32, #tpu.memory_space<vmem>>, vector<8x128xf32>
    tpu.vector_store %arg3[%c0_26, %c0_27], %27 {strides = array<i32>} : memref<8x128xf32, #tpu.memory_space<vmem>>, vector<8x128xf32>,
    return
  }
}

</mosaic_0001>

<bundles_post_ra>
// kernel: model_ann_forward.1
= control target key start
LH: loop header
LB: loop body
LE: loop exit
PB: predicated region body
PF: predicated region fallthrough
CT: control target
= control target key end

     0   :  { %8 = vsyncpa [#allocation4], 0  ;;  %s776_s0 = inlined_call_operand.hbm [shape: f32[8,32], index: 0, kind: input, shape index: {}]   ;;  %s777_s1 = inlined_call_operand.hbm [shape: f32[3,128,128], index: 1, kind: input, shape index: {}]   ;;  %s778_s2 = inlined_call_operand.vmem [shape: f32[3,1,128], index: 2, kind: input, shape index: {}]   ;;  %s779_s3 = inlined_call_operand.hbm [shape: f32[8,128], index: 3, kind: output, shape index: {}]  }
   0x1   :  { %9 = vsyncpa [#allocation7], 0 }
   0x2   :  { %10 = vsyncpa [#allocation5], 0  ;;  %s665_s12 = smov [#allocation3]   ;;  %s666_s14 = smov [#allocation6]  }
   0x3   :  { %s17_s13 = sshll.u32 %s665_s12, 4  ;;  %s26_s15 = sshll.u32 %s666_s14, 4  ;;  %s18_s13 = int_to_ptr.vmem [resolvable:$true] %s17_s13  ;;  %s693_s15 = int_to_ptr.vmem [resolvable:$true] %s26_s15 }
   0x4   :  { %s593_s18 = scalar_lea.hbm %s776_s0, 128 }
   0x5   :  { %p594_p0 = scmp.ne.s32.totalorder %s776_s0, %s593_s18  ;;  %p597_p1 = scmp.lt.u32.totalorder %s593_s18, %s776_s0 }
   0x7   :  { %p599_p2 = pnand %p597_p1, %p594_p0 }
   0x9   :  { %602 = shalt.err (!%p599_p2)
}
   0xa   :  { %s603_s23 = scalar_lea.vmem %s18_s13, 128  ;;  %p608_p4 = scmp.lt.s32.totalorder %s18_s13, %s18_s13 }
   0xb   :  { %p604_p3 = scmp.ne.s32.totalorder %s18_s13, %s603_s23  ;;  %p609_p5 = scmp.lt.s32.totalorder %s603_s23, %s603_s23 }
   0xd   :  { %p610_p6 = por %p609_p5, %p608_p4 }
   0xf   :  { %p611_p7 = pnand %p610_p6, %p604_p3 }
  0x11   :  { %614 = shalt.err (!%p611_p7)
}
  0x12   :  { %20 = dma.hbm_to_vmem [thread:$0]  %s776_s0, 128, %s18_s13, [#allocation4]  }
  0x13   :  { %s615_s28 = scalar_lea.hbm %s777_s1, 6144 }
  0x14   :  { %p616_p8 = scmp.ne.s32.totalorder %s777_s1, %s615_s28  ;;  %p619_p9 = scmp.lt.u32.totalorder %s615_s28, %s777_s1 }
  0x16   :  { %p621_p10 = pnand %p619_p9, %p616_p8 }
  0x18   :  { %624 = shalt.err (!%p621_p10)
}
  0x19   :  { %s625_s6 = scalar_lea.vmem %s693_s15, 6144  ;;  %p630_p12 = scmp.lt.s32.totalorder %s693_s15, %s693_s15 }
  0x1a   :  { %p626_p11 = scmp.ne.s32.totalorder %s693_s15, %s625_s6  ;;  %p631_p13 = scmp.lt.s32.totalorder %s625_s6, %s625_s6 }
  0x1c   :  { %p632_p0 = por %p631_p13, %p630_p12 }
  0x1e   :  { %p633_p1 = pnand %p632_p0, %p626_p11 }
  0x20   :  { %636 = shalt.err (!%p633_p1)
}
  0x21   :  { %s667_s0 = smov 128   ;;  %s668_s7 = smov 8  }
  0x22   :  { %32 = dma.hbm_to_vmem [thread:$0]  %s777_s1, 6144, %s693_s15, [#allocation7], %s667_s0, %s667_s0, %s668_s7  }
  0x23   :  { %659 = dma.done.wait [#allocation4], 128  }
  0x24   :  { %660 = vsyncadd [#allocation4], 4294967168 }
  0x25   :  { %661 = dma.done.wait [#allocation7], 6144  }
  0x26   :  { %662 = vsyncadd [#allocation7], 4294961152  ;;  %v669_v0 = vmov 0.0|0.0   ;;  %v670_v1 = vmov 0.0   ;;  %vm671_vm0 = vmmov 0   ;;  %v46_v2 = vld [vmem:[#allocation6] sm:$0xff] }
  0x27   :  { %509 = vmatprep.subr.bf16.mxu0 %v669_v0  ;;  %41 = vst [vmem:[#allocation2] sm:$0xff] %v670_v1  ;;  %436 = vmatprep.mubr.msk.f32.mxu0 %vm671_vm0, %v670_v1  ;;  %v47_v3 = vld [vmem:[#allocation6 + $0x8] sm:$0xff]  ;;  %v48_v4 = vld [vmem:[#allocation6 + $0x10] sm:$0xff]  ;;  %v49_v6 = vld [vmem:[#allocation6 + $0x18] sm:$0xff]  ;;  %vm43_vm1 = vcmask 261120   ;;  %s672_s15 = smov [#allocation8]  }
  0x28   :  { %533 = vmatprep.subr.bf16.mxu1 %v669_v0  ;;  %471 = vmatprep.mubr.msk.f32.mxu1 %vm671_vm0, %v670_v1  ;;  %v510_v5 = vpack.c.bf16 %v47_v3, %v46_v2  ;;  %v513_v7 = vpack.c.bf16 %v49_v6, %v48_v4  ;;  %v50_v8 = vld [vmem:[#allocation6 + $0x20] sm:$0xff]  ;;  %v51_v9 = vld [vmem:[#allocation6 + $0x28] sm:$0xff]  ;;  %v42_v10 = vld [vmem:[#allocation3] sm:$0xff]  ;;  %s338_s16 = sshll.u32 %s672_s15, 4  ;;  %s339_s16 = int_to_ptr.vmem [resolvable:$true] %s338_s16 }
  0x29   :  { %v141_v11 = vld [vmem:[#allocation6 + $0x80] sm:$0xff]  ;;  %44 = vst.msk [vmem:[#allocation2] sm:$0xff] %vm43_vm1, %v42_v10  ;;  %v142_v12 = vld [vmem:[#allocation6 + $0x88] sm:$0xff]  ;;  %v143_v13 = vld [vmem:[#allocation6 + $0x90] sm:$0xff]  ;;  %v516_v15 = vpack.c.bf16 %v51_v9, %v50_v8  ;;  %s637_s17 = scalar_lea.vmem %s339_s16, 128  ;;  %p642_p3 = scmp.lt.s32.totalorder %s339_s16, %s339_s16 }
  0x2a   :  { %511 = vmatpush3.bf16.msra.mxu0 %v510_v5  ;;  %v144_v14 = vld [vmem:[#allocation6 + $0x98] sm:$0xff]  ;;  %v534_v16 = vpack.c.bf16 %v142_v12, %v141_v11  ;;  %v52_v17 = vld [vmem:[#allocation6 + $0x30] sm:$0xff]  ;;  %v145_v20 = vld [vmem:[#allocation6 + $0xa0] sm:$0xff]  ;;  %p638_p2 = scmp.ne.s32.totalorder %s339_s16, %s637_s17  ;;  %p643_p4 = scmp.lt.s32.totalorder %s637_s17, %s637_s17 }
  0x2b   :  { %512 = vmatprep.subr.bf16.mxu0 %v669_v0  ;;  %v53_v18 = vld [vmem:[#allocation6 + $0x38] sm:$0xff]  ;;  %v537_v19 = vpack.c.bf16 %v144_v14, %v143_v13  ;;  %v146_v21 = vld [vmem:[#allocation6 + $0xa8] sm:$0xff]  ;;  %v54_v23 = vld [vmem:[#allocation6 + $0x40] sm:$0xff] }
  0x2c   :  { %535 = vmatpush3.bf16.msra.mxu1 %v534_v16  ;;  %v519_v22 = vpack.c.bf16 %v53_v18, %v52_v17  ;;  %v55_v24 = vld [vmem:[#allocation6 + $0x48] sm:$0xff]  ;;  %v540_v25 = vpack.c.bf16 %v146_v21, %v145_v20  ;;  %v147_v26 = vld [vmem:[#allocation6 + $0xb0] sm:$0xff]  ;;  %v148_v27 = vld [vmem:[#allocation6 + $0xb8] sm:$0xff]  ;;  %p644_p5 = por %p643_p4, %p642_p3 }
  0x2d   :  { %536 = vmatprep.subr.bf16.mxu1 %v669_v0  ;;  %v522_v28 = vpack.c.bf16 %v55_v24, %v54_v23  ;;  %v56_v29 = vld [vmem:[#allocation6 + $0x50] sm:$0xff]  ;;  %v57_v30 = vld [vmem:[#allocation6 + $0x58] sm:$0xff]  ;;  %v543_v31 = vpack.c.bf16 %v148_v27, %v147_v26  ;;  %v149_v32 = vld [vmem:[#allocation6 + $0xc0] sm:$0xff] }
  0x2e   :  { %514 = vmatpush3.bf16.msra.mxu0 %v513_v7  ;;  %v150_v33 = vld [vmem:[#allocation6 + $0xc8] sm:$0xff]  ;;  %v525_v34 = vpack.c.bf16 %v57_v30, %v56_v29  ;;  %v58_v35 = vld [vmem:[#allocation6 + $0x60] sm:$0xff]  ;;  %v60_v39 = vld [vmem:[#allocation6 + $0x70] sm:$0xff]  ;;  %p645_p6 = pnand %p644_p5, %p638_p2 }
  0x2f   :  { %515 = vmatprep.subr.bf16.mxu0 %v669_v0  ;;  %v59_v36 = vld [vmem:[#allocation6 + $0x68] sm:$0xff]  ;;  %v546_v37 = vpack.c.bf16 %v150_v33, %v149_v32  ;;  %v61_v40 = vld [vmem:[#allocation6 + $0x78] sm:$0xff]  ;;  %v151_v43 = vld [vmem:[#allocation6 + $0xd0] sm:$0xff] }
  0x30   :  { %538 = vmatpush3.bf16.msra.mxu1 %v537_v19  ;;  %v528_v38 = vpack.c.bf16 %v59_v36, %v58_v35  ;;  %v531_v41 = vpack.c.bf16 %v61_v40, %v60_v39  ;;  %v45_v42 = vld [vmem:[#allocation2] sm:$0xff]  ;;  %v152_v44 = vld [vmem:[#allocation6 + $0xd8] sm:$0xff]  ;;  %v153_v46 = vld [vmem:[#allocation6 + $0xe0] sm:$0xff] }
  0x31   :  { %539 = vmatprep.subr.bf16.mxu1 %v669_v0  ;;  %v549_v45 = vpack.c.bf16 %v152_v44, %v151_v43  ;;  %v154_v47 = vld [vmem:[#allocation6 + $0xe8] sm:$0xff]  ;;  %v155_v49 = vld [vmem:[#allocation6 + $0xf0] sm:$0xff]  ;;  %v156_v50 = vld [vmem:[#allocation6 + $0xf8] sm:$0xff] }
  0x32   :  { %517 = vmatpush3.bf16.msra.mxu0 %v516_v15  ;;  %v552_v48 = vpack.c.bf16 %v154_v47, %v153_v46  ;;  %v555_v51 = vpack.c.bf16 %v156_v50, %v155_v49  ;;  %v237_v52 = vld [vmem:[#allocation6 + $0x100] sm:$0xff]  ;;  %v238_v53 = vld [vmem:[#allocation6 + $0x108] sm:$0xff]  ;;  %v239_v54 = vld [vmem:[#allocation6 + $0x110] sm:$0xff] }
  0x33   :  { %518 = vmatprep.subr.bf16.mxu0 %v669_v0  ;;  %v558_v55 = vpack.c.bf16 %v238_v53, %v237_v52  ;;  %v240_v56 = vld [vmem:[#allocation6 + $0x118] sm:$0xff]  ;;  %v241_v58 = vld [vmem:[#allocation6 + $0x120] sm:$0xff]  ;;  %v242_v59 = vld [vmem:[#allocation6 + $0x128] sm:$0xff] }
  0x34   :  { %541 = vmatpush3.bf16.msra.mxu1 %v540_v25  ;;  %v561_v57 = vpack.c.bf16 %v240_v56, %v239_v54  ;;  %v564_v60 = vpack.c.bf16 %v242_v59, %v241_v58  ;;  %v243_v61 = vld [vmem:[#allocation6 + $0x130] sm:$0xff]  ;;  %v244_v62 = vld [vmem:[#allocation6 + $0x138] sm:$0xff]  ;;  %v246_v2 = vld [vmem:[#allocation6 + $0x148] sm:$0xff] }
  0x35   :  { %542 = vmatprep.subr.bf16.mxu1 %v669_v0  ;;  %v567_v63 = vpack.c.bf16 %v244_v62, %v243_v61  ;;  %v348_v4 = vld [vmem:[%s778_s2] ss:$0 sm:$0xff]  ;;  %v248_v10 = vld [vmem:[#allocation6 + $0x158] sm:$0xff]  ;;  %v249_v12 = vld [vmem:[#allocation6 + $0x160] sm:$0xff] }
  0x36   :  { %520 = vmatpush3.bf16.msra.mxu0 %v519_v22  ;;  %v247_v9 = vld [vmem:[#allocation6 + $0x150] sm:$0xff]  ;;  %v250_v13 = vld [vmem:[#allocation6 + $0x168] sm:$0xff]  ;;  %v252_v16 = vld [vmem:[#allocation6 + $0x178] sm:$0xff] }
  0x37   :  { %521 = vmatprep.subr.bf16.mxu0 %v669_v0  ;;  %v573_v11 = vpack.c.bf16 %v248_v10, %v247_v9  ;;  %v576_v14 = vpack.c.bf16 %v250_v13, %v249_v12  ;;  %v251_v15 = vld [vmem:[#allocation6 + $0x170] sm:$0xff] }
  0x38   :  { %544 = vmatpush3.bf16.msra.mxu1 %v543_v31  ;;  %v579_v17 = vpack.c.bf16 %v252_v16, %v251_v15  ;;  %v350_v18 = vld [vmem:[%s778_s2 + $0x1] ss:$0 sm:$0xff]  ;;  %v352_v23 = vld [vmem:[%s778_s2 + $0x2] ss:$0 sm:$0xff] }
  0x39   :  { %545 = vmatprep.subr.bf16.mxu1 %v669_v0 }
  0x3a   :  { %523 = vmatpush3.bf16.msra.mxu0 %v522_v28 }
  0x3b   :  { %524 = vmatprep.subr.bf16.mxu0 %v669_v0 }
  0x3c   :  { %547 = vmatpush3.bf16.msra.mxu1 %v546_v37 }
  0x3d   :  { %548 = vmatprep.subr.bf16.mxu1 %v669_v0 }
  0x3e   :  { %526 = vmatpush3.bf16.msra.mxu0 %v525_v34 }
  0x3f   :  { %527 = vmatprep.subr.bf16.mxu0 %v669_v0 }
  0x40   :  { %550 = vmatpush3.bf16.msra.mxu1 %v549_v45 }
  0x41   :  { %551 = vmatprep.subr.bf16.mxu1 %v669_v0 }
  0x42   :  { %529 = vmatpush3.bf16.msra.mxu0 %v528_v38 }
  0x43   :  { %530 = vmatprep.subr.bf16.mxu0 %v669_v0 }
  0x44   :  { %553 = vmatpush3.bf16.msra.mxu1 %v552_v48 }
  0x45   :  { %554 = vmatprep.subr.bf16.mxu1 %v669_v0 }
  0x46   :  { %532 = vmatpush3.bf16.msra.mxu0 %v531_v41 }
  0x47   :  { %557 = vmatprep.subr.bf16.mxu0 %v669_v0 }
  0x48   :  { %556 = vmatpush3.bf16.msra.mxu1 %v555_v51 }
  0x49   :  { %437 = vmatmul.mubr.f32.vlgmr.msra.gmra.mrb[0].mxu0 %v45_v42 }
  0x4a   :  { %506 = vmatprep.mubr.msk.f32.mxu0 %vm671_vm0, %v670_v1  ;;  %559 = vmatpush3.bf16.msra.mxu0 %v558_v55  ;;  %v245_v1 = vld [vmem:[#allocation6 + $0x140] sm:$0xff] }
  0x4b   :  { %560 = vmatprep.subr.bf16.mxu0 %v669_v0  ;;  %v570_v3 = vpack.c.bf16 %v246_v2, %v245_v1 }
  0x4e   :  { %562 = vmatpush3.bf16.msra.mxu0 %v561_v57 }
  0x4f   :  { %563 = vmatprep.subr.bf16.mxu0 %v669_v0 }
  0x52   :  { %565 = vmatpush3.bf16.msra.mxu0 %v564_v60 }
  0x53   :  { %566 = vmatprep.subr.bf16.mxu0 %v669_v0 }
  0x56   :  { %568 = vmatpush3.bf16.msra.mxu0 %v567_v63 }
  0x57   :  { %569 = vmatprep.subr.bf16.mxu0 %v669_v0 }
  0x5a   :  { %571 = vmatpush3.bf16.msra.mxu0 %v570_v3 }
  0x5b   :  { %572 = vmatprep.subr.bf16.mxu0 %v669_v0 }
  0x5e   :  { %574 = vmatpush3.bf16.msra.mxu0 %v573_v11 }
  0x5f   :  { %575 = vmatprep.subr.bf16.mxu0 %v669_v0 }
  0x62   :  { %577 = vmatpush3.bf16.msra.mxu0 %v576_v14 }
  0x63   :  { %578 = vmatprep.subr.bf16.mxu0 %v669_v0 }
  0x66   :  { %580 = vmatpush3.bf16.msra.mxu0 %v579_v17 }
 0x11c   :  { %v135_v5 = vpop.f32.mrb[0].mxu0 }
 0x11d   :  { %v136_v6 = vadd.f32 %v348_v4, %v135_v5  ;;  %v438_v7 = vpop.f32.mrb[1].mxu0 }
 0x11f   :  { %589 = vtanh.f32 %v136_v6 }
 0x129   :  { %v590_v8 = vpop.eup %589 }
 0x12a   :  { %472 = vmatmul.mubr.f32.vlgmr.msra.gmra.mrb[0].mxu1 %v590_v8 }
 0x1fd   :  { %v231_v19 = vpop.f32.mrb[0].mxu1 }
 0x1fe   :  { %v232_v20 = vadd.f32 %v350_v18, %v231_v19  ;;  %v473_v21 = vpop.f32.mrb[1].mxu1 }
 0x200   :  { %591 = vtanh.f32 %v232_v20 }
 0x20a   :  { %v592_v22 = vpop.eup %591 }
 0x20b   :  { %507 = vmatmul.mubr.f32.vlgmr.msra.gmra.mrb[2].mxu0 %v592_v22 }
 0x2de   :  { %v327_v24 = vpop.f32.mrb[2].mxu0 }
 0x2df   :  { %v328_v25 = vadd.f32 %v352_v23, %v327_v24  ;;  %v508_v0 = vpop.f32.mrb[3].mxu0 }
 0x2e1   :  { %331 = vst [vmem:[#allocation8] sm:$0xff] %v328_v25 }
 0x2e2   :  { %648 = shalt.err (!%p645_p6)
}
 0x2e3   :  { %s649_s20 = scalar_lea.hbm %s779_s3, 128 }
 0x2e4   :  { %p650_p7 = scmp.ne.s32.totalorder %s779_s3, %s649_s20  ;;  %p653_p8 = scmp.lt.u32.totalorder %s649_s20, %s779_s3 }
 0x2e6   :  { %p655_p9 = pnand %p653_p8, %p650_p7 }
 0x2e8   :  { %658 = shalt.err (!%p655_p9)
}
 0x2e9   :  { %341 = dma.vmem_to_hbm [thread:$0]  %s339_s16, 128, %s779_s3, [#allocation5]  }
 0x2ea   :  { %663 = dma.done.wait [#allocation5], 128  }
 0x2eb   :  { %664 = vsyncadd [#allocation5], 4294967168 }
 0x2ec   :  { %345 = vsyncpa [#allocation4], 1 }
 0x2ed   :  { %346 = vsyncpa [#allocation7], 1 }
 0x2ee   :  { %347 = vsyncpa [#allocation5], 1 }

</bundles_post_ra>
